<compile_context>
chip_gen: v7x
topology: tpu7x:2x2x1
jax: 0.10.0
libtpu: 0.0.40
codegen_flags: <defaults>
</compile_context>

<pallas_src>
import numpy as np
import jax
import jax.numpy as jnp
from jax import lax
from jax.experimental import pallas as pl
from jax.experimental.pallas import tpu as pltpu

d_model = 1
seq_len = 48
hidden_size = 100
input_size = 48
output_size = 1

HIDDEN_PAD = 128          # lane-dense hidden width (100 -> 128)
MAX_TILE_B = 8192         # rows per batch tile; ~9 MiB worst-case VMEM footprint


def _round_up(a, m):
    return ((a + m - 1) // m) * m


def get_positional_encoding(seq_len, d_model):
    """Faithful port of the numpy PE builder (for d_model=1 only the sin half
    is populated; the cos assignment is a zero-width no-op)."""
    pe = np.zeros((seq_len, d_model), dtype=np.float64)
    position = np.arange(0, seq_len).reshape(-1, 1)
    div_term = np.exp(np.arange(0, d_model, 2) * -(np.log(10000.0) / d_model))
    pe[:, 0::2] = np.sin(position * div_term)
    if d_model > 1:
        pe[:, 1::2] = np.cos(position * div_term)
    return jnp.asarray(pe, dtype=jnp.float32)


def _choose_tile_b(batch):
    """Pick the batch tile: as large as possible (amortize per-step overhead),
    but leave >= 2 grid steps when the batch allows it so v7x's second
    TensorCore gets work; multiples of 128 keep the output stores unmasked."""
    b8 = _round_up(batch, 8)
    if b8 < 16:
        return b8                       # single tiny tile
    tile = _round_up(pl.cdiv(b8, 2), 8)  # at least 2 grid steps
    tile = min(tile, MAX_TILE_B)
    if tile >= 128:
        tile = _round_up(tile, 128)     # lane-dense output block
    return tile


def _mlp_pe_kernel(x_ref, w1_ref, b1_ref, w2_ref, b2_ref, o_ref):
    # fc1 (PE already folded into w1) + bias + ReLU on a lane-dense 128 hidden.
    h = jnp.dot(x_ref[...], w1_ref[...], preferred_element_type=jnp.float32)
    h = jnp.maximum(h + b1_ref[...], 0.0)                      # (tile_b, 128)
    # fc2 (single output column) as a skinny MXU pass producing a lane-dense
    # (1, tile_b) row: contract the hidden dim of w2 (1,128) with h (tile_b,128).
    # Zero-padded hidden lanes contribute 0, so the result is exact.
    out = lax.dot_general(
        w2_ref[...], h,
        dimension_numbers=(((1,), (1,)), ((), ())),
        preferred_element_type=jnp.float32)                    # (1, tile_b)
    o_ref[...] = out + b2_ref[0]


def _mlp_pe_pallas(x, w1_p, b1_p, w2_p, b2_s):
    B, in_dim = x.shape
    tile_b = _choose_tile_b(B)
    num_tiles = pl.cdiv(B, tile_b)

    out = pl.pallas_call(
        _mlp_pe_kernel,
        out_shape=jax.ShapeDtypeStruct((num_tiles, tile_b), jnp.float32),
        grid=(num_tiles,),
        in_specs=[
            pl.BlockSpec((tile_b, in_dim), lambda i: (i, 0)),        # x rows
            pl.BlockSpec((in_dim, HIDDEN_PAD), lambda i: (0, 0)),    # w1 (resident)
            pl.BlockSpec((1, HIDDEN_PAD), lambda i: (0, 0)),         # b1 (resident)
            pl.BlockSpec((1, HIDDEN_PAD), lambda i: (0, 0)),         # w2 row (resident)
            pl.BlockSpec(memory_space=pltpu.MemorySpace.SMEM),       # b2 scalar
        ],
        out_specs=pl.BlockSpec((1, tile_b), lambda i: (i, 0)),       # lane-dense
        compiler_params=pltpu.CompilerParams(
            dimension_semantics=("parallel",),
            vmem_limit_bytes=32 * 1024 * 1024),
    )(x, w1_p, b1_p, w2_p, b2_s)

    # Row-major flatten of (num_tiles, tile_b) restores batch order; ragged
    # tail rows (if any) are sliced off here.
    return out.reshape(-1, 1)[:B]


def make_mlp_pe_forward(pe, w1, b1, w2, b2):
    """One-time weight preparation (hoisted out of the per-call path); returns
    a jitted forward fn that only takes x."""
    assert w2.shape[0] == 1, "fc2 kernel path assumes output_size == 1"
    hidden, in_dim = w1.shape
    hpad = HIDDEN_PAD - hidden

    # Fold positional encoding into fc1:  (x*pe) @ W1^T == x @ (W1*pe)^T .
    pe_flat = pe.reshape(1, -1).astype(jnp.float32)             # (1, in)
    w1_p = jnp.pad((w1 * pe_flat).T, ((0, 0), (0, hpad)))       # (in, 128)
    b1_p = jnp.pad(b1, (0, hpad)).reshape(1, HIDDEN_PAD)        # (1, 128)
    w2_p = jnp.pad(w2.reshape(-1), (0, hpad)).reshape(1, HIDDEN_PAD)
    b2_s = b2.reshape(1).astype(jnp.float32)                    # SMEM scalar

    # Materialize once so prep never re-runs per call.
    w1_p, b1_p, w2_p, b2_s = jax.block_until_ready((w1_p, b1_p, w2_p, b2_s))

    @jax.jit
    def forward(x):
        return _mlp_pe_pallas(x, w1_p, b1_p, w2_p, b2_s)

    return forward


def _torch_linear_init(key, out_features, in_features):
    """Deterministic init matching torch.nn.Linear's U(-1/sqrt(fan_in), 1/sqrt(fan_in))."""
    kw, kb = jax.random.split(key)
    bound = 1.0 / np.sqrt(in_features)
    w = jax.random.uniform(kw, (out_features, in_features), jnp.float32, -bound, bound)
    b = jax.random.uniform(kb, (out_features,), jnp.float32, -bound, bound)
    return w, b


def _reference(x, pe, w1, b1, w2, b2):
    B = x.shape[0]
    xr = x.reshape(B, seq_len, d_model) * pe
    xr = xr.reshape(B, -1)
    h = jnp.maximum(xr @ w1.T + b1, 0.0)
    return h @ w2.T + b2


if __name__ == "__main__":
    key = jax.random.PRNGKey(0)
    kx, k1, k2 = jax.random.split(key, 3)

    batch = 8
    x = jax.random.normal(kx, (batch, input_size), jnp.float32)

    pe = get_positional_encoding(seq_len, d_model)
    w1, b1 = _torch_linear_init(k1, hidden_size, input_size)
    w2, b2 = _torch_linear_init(k2, output_size, hidden_size)

    forward = make_mlp_pe_forward(pe, w1, b1, w2, b2)
    out = jax.block_until_ready(forward(x))

    ref = _reference(x, pe, w1, b1, w2, b2)
    np.testing.assert_allclose(np.asarray(out), np.asarray(ref), rtol=1e-5, atol=1e-5)

    print("KERNEL_OK")
</pallas_src>

<mosaic_0001>
module attributes {stable_mosaic.version = 11 : i64} {
  func.func @_mlp_pe_kernel(%arg0: i32, %arg1: memref<8x48xf32, #tpu.memory_space<vmem>>, %arg2: memref<48x128xf32, #tpu.memory_space<vmem>>, %arg3: memref<1x128xf32, #tpu.memory_space<vmem>>, %arg4: memref<1x128xf32, #tpu.memory_space<vmem>>, %arg5: memref<1xf32, #tpu.memory_space<smem>>, %arg6: memref<1x8xf32, #tpu.memory_space<vmem>>) attributes {dimension_semantics = [#tpu.dimension_semantics<parallel>], iteration_bounds = array<i64: 1>, scalar_prefetch = 0 : i64, scratch_operands = 0 : i64, tpu.core_type = #tpu.core_type<tc>, window_params = [{transform_indices = @transform_0, window_bounds = array<i64: 8, 48>}, {pipeline_mode = #tpu.pipeline_mode<synchronous>, transform_indices = @transform_1, window_bounds = array<i64: 48, 128>}, {pipeline_mode = #tpu.pipeline_mode<synchronous>, transform_indices = @transform_2, window_bounds = array<i64: 1, 128>}, {pipeline_mode = #tpu.pipeline_mode<synchronous>, transform_indices = @transform_3, window_bounds = array<i64: 1, 128>}, {transform_indices = @transform_4, window_bounds = array<i64: 1>}, {transform_indices = @transform_5, window_bounds = array<i64: 1, 8>}]} {
    %c0 = arith.constant 0 : index
    %c0_0 = arith.constant 0 : index
    %0 = vector.load %arg1[%c0, %c0_0] : memref<8x48xf32, #tpu.memory_space<vmem>>, vector<8x48xf32>
    %c0_1 = arith.constant 0 : index
    %c0_2 = arith.constant 0 : index
    %1 = vector.load %arg2[%c0_1, %c0_2] : memref<48x128xf32, #tpu.memory_space<vmem>>, vector<48x128xf32>
    %cst = arith.constant dense<0.000000e+00> : vector<8x128xf32>
    %2 = tpu.matmul %0, %1, %cst {dimension_numbers = #tpu.dot_dimension_numbers<[1], [0], [0], [1], [0, 0, 1, 1], [], []>} : vector<8x48xf32>, vector<48x128xf32>, vector<8x128xf32> -> vector<8x128xf32>
    %c0_3 = arith.constant 0 : index
    %c0_4 = arith.constant 0 : index
    %3 = vector.load %arg3[%c0_3, %c0_4] : memref<1x128xf32, #tpu.memory_space<vmem>>, vector<1x128xf32>
    %4 = vector.broadcast %3 : vector<1x128xf32> to vector<8x128xf32>
    %5 = arith.addf %2, %4 : vector<8x128xf32>
    %cst_5 = arith.constant 0.000000e+00 : f32
    %6 = vector.broadcast %cst_5 : f32 to vector<8x128xf32>
    %7 = arith.maximumf %5, %6 : vector<8x128xf32>
    %c0_6 = arith.constant 0 : index
    %c0_7 = arith.constant 0 : index
    %8 = vector.load %arg4[%c0_6, %c0_7] : memref<1x128xf32, #tpu.memory_space<vmem>>, vector<1x128xf32>
    %cst_8 = arith.constant dense<0.000000e+00> : vector<1x8xf32>
    %9 = tpu.matmul %8, %7, %cst_8 {dimension_numbers = #tpu.dot_dimension_numbers<[1], [1], [0], [0], [0, 0, 1, 0], [], []>} : vector<1x128xf32>, vector<8x128xf32>, vector<1x8xf32> -> vector<1x8xf32>
    %c0_9 = arith.constant 0 : index
    %10 = memref.load %arg5[%c0_9] : memref<1xf32, #tpu.memory_space<smem>>
    %11 = vector.broadcast %10 : f32 to vector<1x8xf32>
    %12 = arith.addf %9, %11 : vector<1x8xf32>
    %c0_10 = arith.constant 0 : index
    %c0_11 = arith.constant 0 : index
    %13 = vector.load %arg6[%c0_10, %c0_11] : memref<1x8xf32, #tpu.memory_space<vmem>>, vector<1x8xf32>
    tpu.vector_store %arg6[%c0_10, %c0_11], %12 {strides = array<i32>} : memref<1x8xf32, #tpu.memory_space<vmem>>, vector<1x8xf32>,
    return
  }
  func.func @transform_0(%arg0: i32) -> (i32, i32) {
    %c0_i32 = arith.constant 0 : i32
    %c0_i32_0 = arith.constant 0 : i32
    return %arg0, %c0_i32 : i32, i32
  }
  func.func @transform_1(%arg0: i32) -> (i32, i32) {
    %c0_i32 = arith.constant 0 : i32
    %c0_i32_0 = arith.constant 0 : i32
    %c0_i32_1 = arith.constant 0 : i32
    return %c0_i32, %c0_i32_0 : i32, i32
  }
  func.func @transform_2(%arg0: i32) -> (i32, i32) {
    %c0_i32 = arith.constant 0 : i32
    %c0_i32_0 = arith.constant 0 : i32
    %c0_i32_1 = arith.constant 0 : i32
    return %c0_i32, %c0_i32_0 : i32, i32
  }
  func.func @transform_3(%arg0: i32) -> (i32, i32) {
    %c0_i32 = arith.constant 0 : i32
    %c0_i32_0 = arith.constant 0 : i32
    %c0_i32_1 = arith.constant 0 : i32
    return %c0_i32, %c0_i32_0 : i32, i32
  }
  func.func @transform_4(%arg0: i32) -> i32 {
    %c0_i32 = arith.constant 0 : i32
    %c0_i32_0 = arith.constant 0 : i32
    return %c0_i32 : i32
  }
  func.func @transform_5(%arg0: i32) -> (i32, i32) {
    %c0_i32 = arith.constant 0 : i32
    %c0_i32_0 = arith.constant 0 : i32
    return %arg0, %c0_i32 : i32, i32
  }
}

</mosaic_0001>

<bundles_post_ra>
// kernel: forward.1
= control target key start
LH: loop header
LB: loop body
LE: loop exit
PB: predicated region body
PF: predicated region fallthrough
CT: control target
= control target key end

     0   :  { %11 = vsyncpa [#allocation4], 0  ;;  %s438_s0 = inlined_call_operand.hbm [shape: f32[8,48], index: 0, kind: input, shape index: {}]   ;;  %s439_s1 = inlined_call_operand.hbm [shape: f32[48,128], index: 1, kind: input, shape index: {}]   ;;  %s440_s2 = inlined_call_operand.vmem [shape: f32[1,128], index: 2, kind: input, shape index: {}]   ;;  %s441_s3 = inlined_call_operand.vmem [shape: f32[1,128], index: 3, kind: input, shape index: {}]   ;;  %s442_s4 = inlined_call_operand.<no memory space> [shape: f32[1], index: 4, kind: input, shape index: {}]   ;;  %s443_s5 = inlined_call_operand.hbm [shape: f32[1,8], index: 5, kind: output, shape index: {}]  }
   0x1   :  { %12 = vsyncpa [#allocation7], 0 }
   0x2   :  { %13 = vsyncpa [#allocation5], 0  ;;  %s348_s18 = smov [#allocation3]   ;;  %s349_s20 = smov [#allocation6]  }
   0x3   :  { %s20_s19 = sshll.u32 %s348_s18, 4  ;;  %s29_s21 = sshll.u32 %s349_s20, 4  ;;  %s21_s19 = int_to_ptr.vmem [resolvable:$true] %s20_s19  ;;  %s386_s21 = int_to_ptr.vmem [resolvable:$true] %s29_s21 }
   0x4   :  { %s276_s24 = scalar_lea.hbm %s438_s0, 128 }
   0x5   :  { %p277_p0 = scmp.ne.s32.totalorder %s438_s0, %s276_s24  ;;  %p280_p1 = scmp.lt.u32.totalorder %s276_s24, %s438_s0 }
   0x7   :  { %p282_p2 = pnand %p280_p1, %p277_p0 }
   0x9   :  { %285 = shalt.err (!%p282_p2)
}
   0xa   :  { %s286_s29 = scalar_lea.vmem %s21_s19, 128  ;;  %p291_p4 = scmp.lt.s32.totalorder %s21_s19, %s21_s19 }
   0xb   :  { %p287_p3 = scmp.ne.s32.totalorder %s21_s19, %s286_s29  ;;  %p292_p5 = scmp.lt.s32.totalorder %s286_s29, %s286_s29 }
   0xd   :  { %p293_p6 = por %p292_p5, %p291_p4 }
   0xf   :  { %p294_p7 = pnand %p293_p6, %p287_p3 }
  0x11   :  { %297 = shalt.err (!%p294_p7)
}
  0x12   :  { %23 = dma.hbm_to_vmem [thread:$0]  %s438_s0, 128, %s21_s19, [#allocation4]  }
  0x13   :  { %s298_s9 = scalar_lea.hbm %s439_s1, 768 }
  0x14   :  { %p299_p8 = scmp.ne.s32.totalorder %s439_s1, %s298_s9  ;;  %p302_p9 = scmp.lt.u32.totalorder %s298_s9, %s439_s1 }
  0x16   :  { %p304_p10 = pnand %p302_p9, %p299_p8 }
  0x18   :  { %307 = shalt.err (!%p304_p10)
}
  0x19   :  { %s308_s14 = scalar_lea.vmem %s386_s21, 768  ;;  %p313_p12 = scmp.lt.s32.totalorder %s386_s21, %s386_s21 }
  0x1a   :  { %p309_p11 = scmp.ne.s32.totalorder %s386_s21, %s308_s14  ;;  %p314_p13 = scmp.lt.s32.totalorder %s308_s14, %s308_s14 }
  0x1c   :  { %p315_p0 = por %p314_p13, %p313_p12 }
  0x1e   :  { %p316_p1 = pnand %p315_p0, %p309_p11 }
  0x20   :  { %319 = shalt.err (!%p316_p1)
}
  0x21   :  { %s350_s0 = smov 128   ;;  %s351_s15 = smov 8  }
  0x22   :  { %35 = dma.hbm_to_vmem [thread:$0]  %s439_s1, 768, %s386_s21, [#allocation7], %s350_s0, %s350_s0, %s351_s15  }
  0x23   :  { %342 = dma.done.wait [#allocation4], 128  }
  0x24   :  { %343 = vsyncadd [#allocation4], 4294967168 }
  0x25   :  { %344 = dma.done.wait [#allocation7], 768  }
  0x26   :  { %345 = vsyncadd [#allocation7], 4294966528  ;;  %v352_v0 = vmov 0.0|0.0   ;;  %vm353_vm0 = vmmov 0   ;;  %v354_v1 = vmov 0.0   ;;  %v49_v2 = vld [vmem:[#allocation6] sm:$0xff]  ;;  %v139_v18 = vstv %s442_s4 }
  0x27   :  { %259 = vmatprep.subr.bf16.mxu0 %v352_v0  ;;  %251 = vmatprep.mubr.msk.f32.mxu0 %vm353_vm0, %v354_v1  ;;  %v50_v3 = vld [vmem:[#allocation6 + $0x8] sm:$0xff]  ;;  %v51_v4 = vld [vmem:[#allocation6 + $0x10] sm:$0xff]  ;;  %v52_v6 = vld [vmem:[#allocation6 + $0x18] sm:$0xff]  ;;  %vm62_vm1 = vcmask 392192   ;;  %s355_s23 = smov [#allocation8]   ;;  %vm210_vm2 = vcmask 57344  }
  0x28   :  { %254 = vmatprep.subr.mxu1 %v354_v1  ;;  %256 = vmatprep.mubr.msk.f32.mxu1 %vm353_vm0, %v354_v1  ;;  %v260_v5 = vpack.c.bf16 %v50_v3, %v49_v2  ;;  %v263_v7 = vpack.c.bf16 %v52_v6, %v51_v4  ;;  %v53_v8 = vld [vmem:[#allocation6 + $0x20] sm:$0xff]  ;;  %v54_v9 = vld [vmem:[#allocation6 + $0x28] sm:$0xff]  ;;  %v48_v11 = vld [vmem:[#allocation3] sm:$0xff]  ;;  %s218_s24 = sshll.u32 %s355_s23, 4  ;;  %s219_s24 = int_to_ptr.vmem [resolvable:$true] %s218_s24 }
  0x29   :  { %v266_v10 = vpack.c.bf16 %v54_v9, %v53_v8  ;;  %v228_v12 = vld [vmem:[%s440_s2] ss:$0 sm:$0xff]  ;;  %s320_s2 = scalar_lea.vmem %s219_s24, 16  ;;  %s324_s25 = scalar_lea.vmem %s219_s24, 32 }
  0x2a   :  { %261 = vmatpush3.bf16.msra.mxu0 %v260_v5  ;;  %v137_v17 = vld [vmem:[%s441_s3] sm:$0x1]  ;;  %p321_p2 = scmp.ne.s32.totalorder %s219_s24, %s320_s2  ;;  %p325_p3 = scmp.lt.s32.totalorder %s219_s24, %s219_s24 }
  0x2b   :  { %262 = vmatprep.subr.bf16.mxu0 %v352_v0  ;;  %p326_p4 = scmp.lt.s32.totalorder %s324_s25, %s320_s2 }
  0x2d   :  { %p327_p5 = por %p326_p4, %p325_p3 }
  0x2e   :  { %264 = vmatpush3.bf16.msra.mxu0 %v263_v7 }
  0x2f   :  { %265 = vmatprep.subr.bf16.mxu0 %v352_v0  ;;  %p328_p6 = pnand %p327_p5, %p321_p2 }
  0x32   :  { %267 = vmatpush3.bf16.msra.mxu0 %v266_v10 }
  0x35   :  { %252 = vmatmul.mubr.msk.f32.vlgmr.msra.gmra.mrb[0].mxu0 %vm62_vm1, %v48_v11 }
 0x108   :  { %v132_v13 = vpop.f32.mrb[0].mxu0 }
 0x109   :  { %v133_v14 = vadd.f32 %v228_v12, %v132_v13  ;;  %v253_v15 = vpop.f32.mrb[1].mxu0 }
 0x10b   :  { %v136_v16 = vmax.f32 %v133_v14, 0.0 }
 0x10d   :  { %255 = vmatpush3.xpose.msra.mxu1 %v136_v16 }
 0x110   :  { %257 = vmatmul.mubr.f32.vlgmr.msra.gmra.mrb[0].mxu1 %v137_v17 }
 0x1e3   :  { %v206_v19 = vpop.f32.mrb[0].mxu1 }
 0x1e4   :  { %v207_v20 = vadd.f32 %v206_v19, %v139_v18  ;;  %v258_v21 = vpop.f32.mrb[1].mxu1 }
 0x1e6   :  { %211 = vst.msk [vmem:[#allocation8] sm:$0x1] %vm210_vm2, %v207_v20 }
 0x1e7   :  { %331 = shalt.err (!%p328_p6)
}
 0x1e8   :  { %s332_s4 = scalar_lea.hbm %s443_s5, 16 }
 0x1e9   :  { %p333_p7 = scmp.ne.s32.totalorder %s443_s5, %s332_s4  ;;  %p336_p8 = scmp.lt.u32.totalorder %s332_s4, %s443_s5 }
 0x1eb   :  { %p338_p9 = pnand %p336_p8, %p333_p7 }
 0x1ed   :  { %341 = shalt.err (!%p338_p9)
}
 0x1ee   :  { %221 = dma.vmem_to_hbm [thread:$0]  %s219_s24, 16, %s443_s5, [#allocation5]  }
 0x1ef   :  { %346 = dma.done.wait [#allocation5], 16  }
 0x1f0   :  { %347 = vsyncadd [#allocation5], 4294967280 }
 0x1f1   :  { %225 = vsyncpa [#allocation4], 1 }
 0x1f2   :  { %226 = vsyncpa [#allocation7], 1 }
 0x1f3   :  { %227 = vsyncpa [#allocation5], 1 }

</bundles_post_ra>
